<compile_context>
chip_gen: v5e
topology: v5e:2x2
jax: 0.10.0
libtpu: 0.0.40
codegen_flags: <defaults>
</compile_context>

<pallas_src>
import jax
import jax.numpy as jnp
from jax.experimental import pallas as pl
from jax.experimental.pallas import tpu as pltpu

_MIB = 1024 * 1024


def _round_up(x, m):
    return (x + m - 1) // m * m


def _patch_embed_kernel(x_ref, w_ref, b_ref, o_ref):
    # x_ref: (TM, K) patch rows (pipelined).  w_ref: (K, E) projection and
    # b_ref: (1, E) f32 bias, both resident in VMEM (constant index_map).
    # o_ref: (TM, E) output tile.  Always accumulate in f32 on the MXU.
    acc = jnp.dot(x_ref[...], w_ref[...], preferred_element_type=jnp.float32)
    o_ref[...] = (acc + b_ref[...]).astype(o_ref.dtype)


def _vmem_budget_bytes():
    """Generation-aware VMEM budget for tile selection plus the explicit
    compiler limit (so the budget never exceeds the scoped default silently:
    16 MiB on v5e, 32 MiB on v6e/v7x; v7x has only 64 MiB physical)."""
    try:
        cap = int(pltpu.get_tpu_info().vmem_capacity_bytes)
    except Exception:  # interpret mode / API drift: assume a 128 MiB part
        cap = 128 * _MIB
    budget = int(max(16 * _MIB, min(48 * _MIB, (3 * cap) // 8)))
    limit = int(min(cap - 8 * _MIB, max(2 * budget, budget + 16 * _MIB)))
    return budget, limit


def _choose_tile_m(M, K_pad, E_pad, in_itemsize, out_itemsize, budget_bytes):
    """Pick the row tile TM.

    M <= 128: a single full-extent block (block == full dim is always legal).
    Otherwise: largest of (1024, 512, 256, 128) that fits the VMEM budget
    (double-buffered activation tile at the compute itemsize, double-buffered
    output tile at the OUTPUT itemsize, resident weight/bias counted
    conservatively at 2 buffers), preferring >= 4 grid steps when possible
    (>= 2 otherwise) for pipeline overlap and v7x megacore sharding.
    """
    if M <= 128:
        return M
    fixed = 2 * (K_pad * E_pad * in_itemsize + E_pad * 4)  # weight + f32 bias

    def fits(tm):
        per_step = 2 * tm * K_pad * in_itemsize + 2 * tm * E_pad * out_itemsize
        return fixed + per_step <= budget_bytes

    feasible = [tm for tm in (1024, 512, 256, 128) if fits(tm)]
    if not feasible:
        return 128
    for min_steps in (4, 2, 1):
        for tm in feasible:  # descending order
            if pl.cdiv(M, tm) >= min_steps:
                return tm
    return feasible[-1]


def patch_embedding_conv(x, weight, bias, patch_size,
                         compute_dtype=jnp.bfloat16, out_dtype=None):
    """x: (B, C, H, W) NCHW.  weight: (E, C, P, P).  bias: (E,).
    Returns (B, (H//P)*(W//P), E), matching
    Conv2d(C, E, kernel_size=P, stride=P) + Rearrange('b e h w -> b (h w) e').

    compute_dtype feeds the MXU (bf16 default: bf16-native datapath on every
    generation, half the activation DMA bytes); accumulation is always f32;
    out_dtype defaults to x.dtype."""
    B, C, H, W = x.shape
    P = patch_size
    E = weight.shape[0]
    assert H % P == 0 and W % P == 0, "image size must be divisible by patch size"
    hp, wp = H // P, W // P
    K = C * P * P
    M = B * hp * wp
    in_dtype = jnp.dtype(compute_dtype)
    out_dtype = jnp.dtype(out_dtype) if out_dtype is not None else jnp.dtype(x.dtype)

    # --- layout glue: non-overlapping patches -> (M, K) rows, single pass ---
    # Cast to the compute dtype BEFORE the transpose so the one materialized
    # activation copy is half-size in bf16.  (C, kh, kw) flatten order matches
    # the PyTorch weight layout (E, C, P, P).
    # TODO(synk): fold the patch gather into the kernel (per-image row-strip
    # BlockSpec + in-VMEM regather) so activations are read from HBM exactly
    # once; kept host-side for Mosaic-relayout robustness on tiny trailing dims.
    patches = (
        x.astype(in_dtype)
        .reshape(B, C, hp, P, wp, P)
        .transpose(0, 2, 4, 1, 3, 5)
        .reshape(M, K)
    )

    # --- lane padding (only when needed; fused into the extraction pass) ---
    K_pad = _round_up(K, 128)
    E_pad = _round_up(E, 128)
    if K_pad != K:
        # Write the patches straight into a pre-sized zero buffer instead of a
        # second jnp.pad pass; XLA fuses the transpose producer into the update.
        # Zero K-padding keeps the matmul exact.
        patches = jax.lax.dynamic_update_slice(
            jnp.zeros((M, K_pad), in_dtype), patches, (0, 0))

    w_mat = weight.astype(in_dtype).reshape(E, K).T          # (K, E)
    b_mat = bias.astype(jnp.float32).reshape(1, E)           # (1, E), f32
    if K_pad != K or E_pad != E:
        w_mat = jnp.pad(w_mat, ((0, K_pad - K), (0, E_pad - E)))
    if E_pad != E:
        b_mat = jnp.pad(b_mat, ((0, 0), (0, E_pad - E)))

    budget, vmem_limit = _vmem_budget_bytes()
    TM = _choose_tile_m(M, K_pad, E_pad, in_dtype.itemsize,
                        out_dtype.itemsize, budget)

    # No M padding: the grid covers M with a (possibly) ragged last block.
    # Pallas clips out-of-bounds output rows on store, and each output row
    # depends only on its own input row, so in-bounds rows stay exact.
    grid = (pl.cdiv(M, TM),)

    out_flat = pl.pallas_call(
        _patch_embed_kernel,
        out_shape=jax.ShapeDtypeStruct((M, E_pad), out_dtype),
        grid=grid,
        in_specs=[
            pl.BlockSpec((TM, K_pad), lambda i: (i, 0)),      # activations, pipelined
            pl.BlockSpec((K_pad, E_pad), lambda i: (0, 0)),   # weight, resident in VMEM
            pl.BlockSpec((1, E_pad), lambda i: (0, 0)),       # bias, resident in VMEM
        ],
        out_specs=pl.BlockSpec((TM, E_pad), lambda i: (i, 0)),
        compiler_params=pltpu.CompilerParams(
            dimension_semantics=("parallel",),
            vmem_limit_bytes=vmem_limit,
        ),
    )(patches, w_mat, b_mat)

    out = out_flat if E_pad == E else out_flat[:, :E]
    return out.reshape(B, hp * wp, E)


def _conv_reference(x, weight, bias, P):
    """Conv2d(C, E, kernel_size=P, stride=P) + rearrange 'b e h w -> b (h w) e'."""
    E = weight.shape[0]
    y = jax.lax.conv_general_dilated(
        x, weight, window_strides=(P, P), padding="VALID",
        dimension_numbers=("NCHW", "OIHW", "NCHW"),
    ) + bias.reshape(1, E, 1, 1)
    B = x.shape[0]
    return y.reshape(B, E, -1).transpose(0, 2, 1)


if __name__ == "__main__":
    root = jax.random.PRNGKey(0)

    def make_inputs(key, B, C, H, W, P, E):
        kx, kw, kb = jax.random.split(key, 3)
        x = jax.random.normal(kx, (B, C, H, W), dtype=jnp.float32)
        weight = jax.random.normal(kw, (E, C, P, P), dtype=jnp.float32) * 0.02
        bias = jax.random.normal(kb, (E,), dtype=jnp.float32) * 0.01
        return x, weight, bias

    def bf16_rounded_ref(x, weight, bias, P):
        # The bf16-compute kernel rounds x and weight to bf16 but accumulates
        # in f32; compare against exactly that.
        return _conv_reference(x.astype(jnp.bfloat16).astype(jnp.float32),
                               weight.astype(jnp.bfloat16).astype(jnp.float32),
                               bias, P)

    keys = jax.random.split(root, 3)

    # 1) Module's shapes (batch=2, channels=4, image=16x16, patch=8, emb=128):
    #    exact f32 path plus the default bf16-compute path.
    B, C, H, W, P, E = 2, 4, 16, 16, 8, 128
    x, weight, bias = make_inputs(keys[0], B, C, H, W, P, E)

    out_f32 = jax.block_until_ready(
        patch_embedding_conv(x, weight, bias, P, compute_dtype=jnp.float32))
    assert out_f32.shape == (B, (H // P) * (W // P), E), out_f32.shape
    ref_f32 = _conv_reference(x, weight, bias, P)
    assert jnp.allclose(out_f32, ref_f32, atol=1e-4, rtol=1e-4), \
        float(jnp.max(jnp.abs(out_f32 - ref_f32)))

    out_bf = jax.block_until_ready(patch_embedding_conv(x, weight, bias, P))
    ref_bf = bf16_rounded_ref(x, weight, bias, P)
    assert out_bf.dtype == x.dtype
    assert jnp.allclose(out_bf, ref_bf, atol=1e-2, rtol=1e-2), \
        float(jnp.max(jnp.abs(out_bf - ref_bf)))

    # 2) Unaligned K and E (K = 3*5*5 = 75 -> padded to 128 inside the wrapper,
    #    E = 96 -> 128, output sliced back).
    B, C, H, W, P, E = 2, 3, 15, 15, 5, 96
    x, weight, bias = make_inputs(keys[1], B, C, H, W, P, E)
    out = jax.block_until_ready(patch_embedding_conv(x, weight, bias, P))
    assert out.shape == (B, 9, E), out.shape
    ref = bf16_rounded_ref(x, weight, bias, P)
    assert jnp.allclose(out, ref, atol=1e-2, rtol=1e-2), \
        float(jnp.max(jnp.abs(out - ref)))

    # 3) Ragged M (M = 200, TM = 128 -> 2 grid steps, last block clipped) plus
    #    unaligned K = 192 and E = 160.
    B, C, H, W, P, E = 2, 3, 80, 80, 8, 160
    x, weight, bias = make_inputs(keys[2], B, C, H, W, P, E)
    out = jax.block_until_ready(patch_embedding_conv(x, weight, bias, P))
    assert out.shape == (B, 100, E), out.shape
    ref = bf16_rounded_ref(x, weight, bias, P)
    assert jnp.allclose(out, ref, atol=1e-2, rtol=1e-2), \
        float(jnp.max(jnp.abs(out - ref)))

    print("KERNEL_OK")
</pallas_src>

<mosaic_0001>
module attributes {stable_mosaic.version = 11 : i64} {
  func.func @_patch_embed_kernel(%arg0: i32, %arg1: memref<8x256xf32, #tpu.memory_space<vmem>>, %arg2: memref<256x128xf32, #tpu.memory_space<vmem>>, %arg3: memref<1x128xf32, #tpu.memory_space<vmem>>, %arg4: memref<8x128xf32, #tpu.memory_space<vmem>>) attributes {dimension_semantics = [#tpu.dimension_semantics<parallel>], iteration_bounds = array<i64: 1>, scalar_prefetch = 0 : i64, scratch_operands = 0 : i64, tpu.core_type = #tpu.core_type<tc>, window_params = [{transform_indices = @transform_0, window_bounds = array<i64: 8, 256>}, {pipeline_mode = #tpu.pipeline_mode<synchronous>, transform_indices = @transform_1, window_bounds = array<i64: 256, 128>}, {pipeline_mode = #tpu.pipeline_mode<synchronous>, transform_indices = @transform_2, window_bounds = array<i64: 1, 128>}, {transform_indices = @transform_3, window_bounds = array<i64: 8, 128>}]} {
    %c0 = arith.constant 0 : index
    %c0_0 = arith.constant 0 : index
    %0 = vector.load %arg1[%c0, %c0_0] : memref<8x256xf32, #tpu.memory_space<vmem>>, vector<8x256xf32>
    %c0_1 = arith.constant 0 : index
    %c0_2 = arith.constant 0 : index
    %1 = vector.load %arg2[%c0_1, %c0_2] : memref<256x128xf32, #tpu.memory_space<vmem>>, vector<256x128xf32>
    %cst = arith.constant dense<0.000000e+00> : vector<8x128xf32>
    %2 = tpu.matmul %0, %1, %cst {dimension_numbers = #tpu.dot_dimension_numbers<[1], [0], [0], [1], [0, 0, 1, 1], [], []>} : vector<8x256xf32>, vector<256x128xf32>, vector<8x128xf32> -> vector<8x128xf32>
    %c0_3 = arith.constant 0 : index
    %c0_4 = arith.constant 0 : index
    %3 = vector.load %arg3[%c0_3, %c0_4] : memref<1x128xf32, #tpu.memory_space<vmem>>, vector<1x128xf32>
    %4 = vector.broadcast %3 : vector<1x128xf32> to vector<8x128xf32>
    %5 = arith.addf %2, %4 : vector<8x128xf32>
    %c0_5 = arith.constant 0 : index
    %c0_6 = arith.constant 0 : index
    %6 = vector.load %arg4[%c0_5, %c0_6] : memref<8x128xf32, #tpu.memory_space<vmem>>, vector<8x128xf32>
    tpu.vector_store %arg4[%c0_5, %c0_6], %5 {strides = array<i32>} : memref<8x128xf32, #tpu.memory_space<vmem>>, vector<8x128xf32>,
    return
  }
  func.func @transform_0(%arg0: i32) -> (i32, i32) {
    %c0_i32 = arith.constant 0 : i32
    %c0_i32_0 = arith.constant 0 : i32
    return %arg0, %c0_i32 : i32, i32
  }
  func.func @transform_1(%arg0: i32) -> (i32, i32) {
    %c0_i32 = arith.constant 0 : i32
    %c0_i32_0 = arith.constant 0 : i32
    %c0_i32_1 = arith.constant 0 : i32
    return %c0_i32, %c0_i32_0 : i32, i32
  }
  func.func @transform_2(%arg0: i32) -> (i32, i32) {
    %c0_i32 = arith.constant 0 : i32
    %c0_i32_0 = arith.constant 0 : i32
    %c0_i32_1 = arith.constant 0 : i32
    return %c0_i32, %c0_i32_0 : i32, i32
  }
  func.func @transform_3(%arg0: i32) -> (i32, i32) {
    %c0_i32 = arith.constant 0 : i32
    %c0_i32_0 = arith.constant 0 : i32
    return %arg0, %c0_i32 : i32, i32
  }
}

</mosaic_0001>

<bundles_post_ra>
// kernel: tpu_custom_call.1
= control target key start
LH: loop header
LB: loop body
LE: loop exit
PB: predicated region body
PF: predicated region fallthrough
CT: control target
= control target key end

     0   :  { %8 = vsyncpa [#allocation3], 0  ;;  %s263_s0 = inlined_call_operand.hbm [shape: f32[8,256], index: 0, kind: input, shape index: {}]   ;;  %s264_s1 = inlined_call_operand.hbm [shape: f32[256,128], index: 1, kind: input, shape index: {}]   ;;  %s265_s2 = inlined_call_operand.vmem [shape: f32[1,128], index: 2, kind: input, shape index: {}]   ;;  %s266_s3 = inlined_call_operand.hbm [shape: f32[8,128], index: 3, kind: output, shape index: {}]  }
   0x1   :  { %9 = vsyncpa [#allocation6], 0 }
   0x2   :  { %10 = vsyncpa [#allocation4], 0  ;;  %s16_s14 = sshll.u32 %s263_s0, 4  ;;  %s226_s15 = smov [#allocation2]   ;;  %s17_s14 = int_to_ptr.hbm [resolvable:$true] %s16_s14 }
   0x3   :  { %s18_s16 = sshll.u32 %s226_s15, 4  ;;  %s26_s19 = sshll.u32 %s264_s1, 4  ;;  %s19_s16 = int_to_ptr.vmem [resolvable:$true] %s18_s16  ;;  %s27_s19 = int_to_ptr.hbm [resolvable:$true] %s26_s19 }
   0x4   :  { %21 = dma.hbm_to_vmem [thread:$0]  %s17_s14, 256, %s19_s16, [#allocation3]  }
   0x5   :  { %s227_s20 = smov [#allocation5]   ;;  %s228_s22 = smov 128  }
   0x6   :  { %s28_s21 = sshll.u32 %s227_s20, 4  ;;  %s229_s23 = smov 8   ;;  %s29_s21 = int_to_ptr.vmem [resolvable:$true] %s28_s21 }
   0x7   :  { %34 = dma.hbm_to_vmem [thread:$0]  %s27_s19, 4096, %s29_s21, [#allocation6], %s228_s22, %s228_s22, %s229_s23  }
   0x8   :  { %220 = dma.done.wait [#allocation3], 256  }
   0x9   :  { %221 = vsyncadd [#allocation3], 4294967040 }
   0xa   :  { %222 = dma.done.wait [#allocation6], 4096  }
   0xb   :  { %223 = vsyncadd [#allocation6], 4294963200  ;;  %v62_v0 = vld [vmem:[#allocation5 + $0x78] sm:$0xff]  ;;  %v61_v1 = vld [vmem:[#allocation5 + $0x70] sm:$0xff]  ;;  %s230_s24 = smov [#allocation7]   ;;  %s131_s28 = sshll.u32 %s266_s3, 4  ;;  %s132_s28 = int_to_ptr.hbm [resolvable:$true] %s131_s28 }
   0xc   :  { %v78_v2 = vld [vmem:[#allocation5 + $0xf8] sm:$0xff]  ;;  %83 = vmatpush.msra.mxu0 %v62_v0  ;;  %v77_v3 = vld [vmem:[#allocation5 + $0xf0] sm:$0xff]  ;;  %v60_v4 = vld [vmem:[#allocation5 + $0x68] sm:$0xff]  ;;  %s129_s25 = sshll.u32 %s230_s24, 4  ;;  %s130_s25 = int_to_ptr.vmem [resolvable:$true] %s129_s25 }
   0xd   :  { %103 = vmatpush.msra.mxu1 %v78_v2  ;;  %v76_v5 = vld [vmem:[#allocation5 + $0xe8] sm:$0xff]  ;;  %v59_v6 = vld [vmem:[#allocation5 + $0x60] sm:$0xff]  ;;  %v58_v8 = vld [vmem:[#allocation5 + $0x58] sm:$0xff] }
   0xe   :  { %84 = vmatpush.msra.mxu0 %v61_v1  ;;  %v75_v7 = vld [vmem:[#allocation5 + $0xe0] sm:$0xff]  ;;  %v74_v9 = vld [vmem:[#allocation5 + $0xd8] sm:$0xff]  ;;  %v57_v10 = vld [vmem:[#allocation5 + $0x50] sm:$0xff] }
   0xf   :  { %104 = vmatpush.msra.mxu1 %v77_v3  ;;  %v73_v11 = vld [vmem:[#allocation5 + $0xd0] sm:$0xff]  ;;  %v56_v12 = vld [vmem:[#allocation5 + $0x48] sm:$0xff]  ;;  %v55_v14 = vld [vmem:[#allocation5 + $0x40] sm:$0xff] }
  0x10   :  { %85 = vmatpush.msra.mxu0 %v60_v4  ;;  %v72_v13 = vld [vmem:[#allocation5 + $0xc8] sm:$0xff]  ;;  %v71_v15 = vld [vmem:[#allocation5 + $0xc0] sm:$0xff]  ;;  %v54_v16 = vld [vmem:[#allocation5 + $0x38] sm:$0xff] }
  0x11   :  { %105 = vmatpush.msra.mxu1 %v76_v5  ;;  %v70_v17 = vld [vmem:[#allocation5 + $0xb8] sm:$0xff]  ;;  %v53_v18 = vld [vmem:[#allocation5 + $0x30] sm:$0xff]  ;;  %v52_v20 = vld [vmem:[#allocation5 + $0x28] sm:$0xff] }
  0x12   :  { %86 = vmatpush.msra.mxu0 %v59_v6  ;;  %v69_v19 = vld [vmem:[#allocation5 + $0xb0] sm:$0xff]  ;;  %v68_v21 = vld [vmem:[#allocation5 + $0xa8] sm:$0xff]  ;;  %v51_v22 = vld [vmem:[#allocation5 + $0x20] sm:$0xff] }
  0x13   :  { %106 = vmatpush.msra.mxu1 %v75_v7  ;;  %v67_v23 = vld [vmem:[#allocation5 + $0xa0] sm:$0xff]  ;;  %v50_v24 = vld [vmem:[#allocation5 + $0x18] sm:$0xff]  ;;  %v49_v26 = vld [vmem:[#allocation5 + $0x10] sm:$0xff] }
  0x14   :  { %87 = vmatpush.msra.mxu0 %v58_v8  ;;  %v66_v25 = vld [vmem:[#allocation5 + $0x98] sm:$0xff]  ;;  %v65_v27 = vld [vmem:[#allocation5 + $0x90] sm:$0xff]  ;;  %v48_v28 = vld [vmem:[#allocation5 + $0x8] sm:$0xff] }
  0x15   :  { %107 = vmatpush.msra.mxu1 %v74_v9  ;;  %v64_v29 = vld [vmem:[#allocation5 + $0x88] sm:$0xff]  ;;  %v47_v30 = vld [vmem:[#allocation5] sm:$0xff]  ;;  %v45_v32 = vld [vmem:[#allocation2] sm:$0xff] }
  0x16   :  { %88 = vmatpush.msra.mxu0 %v57_v10  ;;  %v63_v31 = vld [vmem:[#allocation5 + $0x80] sm:$0xff]  ;;  %v46_v33 = vld [vmem:[#allocation2 + $0x8] sm:$0xff]  ;;  %v147_v34 = vld [vmem:[%s265_s2] ss:$0 sm:$0xff] }
  0x17   :  { %108 = vmatpush.msra.mxu1 %v73_v11 }
  0x18   :  { %89 = vmatpush.msra.mxu0 %v56_v12 }
  0x19   :  { %109 = vmatpush.msra.mxu1 %v72_v13 }
  0x1a   :  { %90 = vmatpush.msra.mxu0 %v55_v14 }
  0x1b   :  { %110 = vmatpush.msra.mxu1 %v71_v15 }
  0x1c   :  { %91 = vmatpush.msra.mxu0 %v54_v16 }
  0x1d   :  { %111 = vmatpush.msra.mxu1 %v70_v17 }
  0x1e   :  { %92 = vmatpush.msra.mxu0 %v53_v18 }
  0x1f   :  { %112 = vmatpush.msra.mxu1 %v69_v19 }
  0x20   :  { %93 = vmatpush.msra.mxu0 %v52_v20 }
  0x21   :  { %113 = vmatpush.msra.mxu1 %v68_v21 }
  0x22   :  { %94 = vmatpush.msra.mxu0 %v51_v22 }
  0x23   :  { %114 = vmatpush.msra.mxu1 %v67_v23 }
  0x24   :  { %95 = vmatpush.msra.mxu0 %v50_v24 }
  0x25   :  { %115 = vmatpush.msra.mxu1 %v66_v25 }
  0x26   :  { %96 = vmatpush.msra.mxu0 %v49_v26 }
  0x27   :  { %116 = vmatpush.msra.mxu1 %v65_v27 }
  0x28   :  { %97 = vmatpush.msra.mxu0 %v48_v28 }
  0x29   :  { %117 = vmatpush.msra.mxu1 %v64_v29 }
  0x2a   :  { %98 = vmatpush.msra.mxu0 %v47_v30 }
  0x2b   :  { %118 = vmatpush.msra.mxu1 %v63_v31  ;;  %99 = vmatmul.f32.vlgmr.msra.gmra.mxu0 %v45_v32 }
  0x2c   :  { %119 = vmatmul.f32.vlgmr.msra.gmra.mxu1 %v46_v33 }
  0xa8   :  { %v100_v35 = vpop.f32.mrf.mxu0 }
  0xa9   :  { %v120_v36 = vpop.f32.mrf.mxu1  ;;  %v101_v37 = vadd.f32 %v147_v34, %v100_v35 }
  0xab   :  { %v121_v38 = vadd.f32 %v120_v36, %v101_v37 }
  0xad   :  { %123 = vst [vmem:[#allocation7] sm:$0xff] %v121_v38 }
  0xae   :  { %134 = dma.vmem_to_hbm [thread:$0]  %s130_s25, 128, %s132_s28, [#allocation4]  }
  0xaf   :  { %224 = dma.done.wait [#allocation4], 128  }
  0xb0   :  { %225 = vsyncadd [#allocation4], 4294967168 }
  0xb1   :  { %139 = vsyncpa [#allocation3], 1 }
  0xb2   :  { %140 = vsyncpa [#allocation6], 1 }
  0xb3   :  { %141 = vsyncpa [#allocation4], 1 }

</bundles_post_ra>
